<compile_context>
chip_gen: v7x
topology: tpu7x:2x2x1
jax: 0.10.0
libtpu: 0.0.40
codegen_flags: <defaults>
</compile_context>

<pallas_src>
import math

import jax
import jax.numpy as jnp
from jax import lax
from jax.experimental import pallas as pl
from jax.experimental.pallas import tpu as pltpu


def _make_decoder_kernel(t_logit: float, n_valid: int, tm: int, tn: int):
    """t_logit / n_valid are trace-time constants (z.shape is static)."""

    def kernel(z_ref, zt_ref, w_ref, out_ref):
        i = pl.program_id(0)          # row-tile index
        j = pl.program_id(1)          # col-tile index

        # z @ W for this row tile.  Recomputed per (i, j) tile so both grid
        # axes stay "parallel"; at D=32 this is negligible vs the output DMA.
        zw = jnp.dot(z_ref[...], w_ref[...],
                     preferred_element_type=jnp.float32,
                     precision=lax.Precision.HIGHEST)

        # (tm, D) @ (D, tn) plain NN matmul; z was transposed once in the
        # wrapper, so no per-tile transpose and the col block is lane-dense.
        logits = jnp.dot(zw, zt_ref[...],
                         preferred_element_type=jnp.float32,
                         precision=lax.Precision.HIGHEST)

        # Fused threshold (logit domain, no per-element sigmoid) + padding
        # mask (outer product of a (tm,1) row mask and a (1,tn) col mask).
        row_ids = lax.broadcasted_iota(jnp.int32, (tm, 1), 0) + i * tm
        col_ids = lax.broadcasted_iota(jnp.int32, (1, tn), 1) + j * tn
        valid = (row_ids < n_valid) & (col_ids < n_valid)
        out_ref[...] = jnp.where(valid & (logits > t_logit),
                                 jnp.float32(1.0), jnp.float32(0.0))

    return kernel


def bilinear_edge_decoder(z, weight, max_nodes, threshold=0.5, *,
                          tile_m=256, tile_n=1024):
    """z: (actual_nodes, input_dim) f32; weight: (input_dim, input_dim) f32.
    Returns (max_nodes, max_nodes) f32 padded binary adjacency."""
    actual_nodes, input_dim = z.shape
    assert weight.shape == (input_dim, input_dim)
    assert actual_nodes <= max_nodes
    # TODO(synk): thresholds outside (0,1) (all-ones / all-zeros n x n block in
    # the PyTorch module) are not handled by the logit-domain compare.
    assert 0.0 < threshold < 1.0, "threshold must be in (0, 1)"

    # sigmoid(x) > t  <=>  x > logit(t)   (strict monotonicity)
    t_logit = math.log(threshold / (1.0 - threshold))

    # Tile selection.  Output is written at exactly (max_nodes, max_nodes):
    # no padded compute buffer, no post-kernel slice.
    if max_nodes <= tile_n:
        # Single block spanning the whole output (block == full array dims is
        # always a legal block shape regardless of (8,128) divisibility).
        tm = tn = max_nodes
    else:
        assert tile_m % 8 == 0 and tile_n % 128 == 0, "tiles must be (8,128)-aligned"
        tm, tn = tile_m, tile_n
    grid = (pl.cdiv(max_nodes, tm), pl.cdiv(max_nodes, tn))

    # Pad z rows so INPUT blocks never overhang (output edge blocks may be
    # partial; the in-kernel row/col < n mask already zeroes padded positions).
    z_rows = max(grid[0] * tm, grid[1] * tn)
    z_f32 = z.astype(jnp.float32)
    z_pad = jnp.zeros((z_rows, input_dim), jnp.float32).at[:actual_nodes, :].set(z_f32)
    zt_pad = z_pad.T                        # (D, z_rows): lane-dense col tiles
    w_f32 = weight.astype(jnp.float32)

    kernel = _make_decoder_kernel(float(t_logit), actual_nodes, tm, tn)

    return pl.pallas_call(
        kernel,
        out_shape=jax.ShapeDtypeStruct((max_nodes, max_nodes), jnp.float32),
        grid=grid,
        in_specs=[
            pl.BlockSpec((tm, input_dim), lambda i, j: (i, 0)),         # z row tile
            pl.BlockSpec((input_dim, tn), lambda i, j: (0, j)),         # z^T col tile
            pl.BlockSpec((input_dim, input_dim), lambda i, j: (0, 0)),  # W
        ],
        out_specs=pl.BlockSpec((tm, tn), lambda i, j: (i, j)),
        compiler_params=pltpu.CompilerParams(
            dimension_semantics=("parallel", "parallel")),
    )(z_pad, zt_pad, w_f32)


def xavier_uniform(key, shape, dtype=jnp.float32):
    fan_in, fan_out = shape[0], shape[1]
    limit = (6.0 / (fan_in + fan_out)) ** 0.5
    return jax.random.uniform(key, shape, dtype=dtype, minval=-limit, maxval=limit)


def reference(z, weight, max_nodes, threshold=0.5):
    logits = jnp.dot(jnp.dot(z, weight, precision="highest"), z.T,
                     precision="highest")
    adj = jax.nn.sigmoid(logits)
    adj_binary = (adj > threshold).astype(jnp.float32)
    n = z.shape[0]
    padded = jnp.zeros((max_nodes, max_nodes), dtype=jnp.float32)
    return padded.at[:n, :n].set(adj_binary)


if __name__ == "__main__":
    input_dim = 32
    threshold = 0.5
    key = jax.random.PRNGKey(0)
    k_w, k_z, k_w2, k_z2 = jax.random.split(key, 4)

    # --- small config matching the module spec (single-block path) ---
    max_nodes, actual_nodes = 16, 12
    weight = xavier_uniform(k_w, (input_dim, input_dim))
    z = jax.random.normal(k_z, (actual_nodes, input_dim), dtype=jnp.float32)

    out = jax.block_until_ready(bilinear_edge_decoder(z, weight, max_nodes, threshold))
    ref = reference(z, weight, max_nodes, threshold)
    assert out.shape == (max_nodes, max_nodes)
    assert jnp.array_equal(out, ref), "Pallas output mismatch vs JAX reference (small)"

    # --- larger config exercising the tiled cdiv-grid / partial-edge path ---
    max_nodes2, actual_nodes2 = 300, 277
    weight2 = xavier_uniform(k_w2, (input_dim, input_dim))
    z2 = jax.random.normal(k_z2, (actual_nodes2, input_dim), dtype=jnp.float32)
    out2 = jax.block_until_ready(
        bilinear_edge_decoder(z2, weight2, max_nodes2, threshold,
                              tile_m=128, tile_n=128))
    ref2 = reference(z2, weight2, max_nodes2, threshold)
    assert out2.shape == (max_nodes2, max_nodes2)
    # Hard threshold: only allow disagreement for logits within float noise of
    # logit(threshold) (sigmoid rounding can flip those either way).
    t_logit = math.log(threshold / (1.0 - threshold))
    logits2 = jnp.dot(jnp.dot(z2, weight2, precision="highest"), z2.T,
                      precision="highest")
    near = jnp.zeros((max_nodes2, max_nodes2), dtype=bool)
    near = near.at[:actual_nodes2, :actual_nodes2].set(jnp.abs(logits2 - t_logit) < 1e-5)
    assert bool(jnp.all((out2 == ref2) | near)), \
        "Pallas output mismatch vs JAX reference (tiled)"

    print("KERNEL_OK")
</pallas_src>

<mosaic_0001>
module attributes {stable_mosaic.version = 11 : i64} {
  func.func @kernel(%arg0: i32, %arg1: i32, %arg2: memref<16x32xf32, #tpu.memory_space<vmem>>, %arg3: memref<32x16xf32, #tpu.memory_space<vmem>>, %arg4: memref<32x32xf32, #tpu.memory_space<vmem>>, %arg5: memref<16x16xf32, #tpu.memory_space<vmem>>) attributes {dimension_semantics = [#tpu.dimension_semantics<parallel>, #tpu.dimension_semantics<parallel>], iteration_bounds = array<i64: 1, 1>, scalar_prefetch = 0 : i64, scratch_operands = 0 : i64, tpu.core_type = #tpu.core_type<tc>, window_params = [{transform_indices = @transform_0, window_bounds = array<i64: 16, 32>}, {transform_indices = @transform_1, window_bounds = array<i64: 32, 16>}, {pipeline_mode = #tpu.pipeline_mode<synchronous>, transform_indices = @transform_2, window_bounds = array<i64: 32, 32>}, {transform_indices = @transform_3, window_bounds = array<i64: 16, 16>}]} {
    %c0 = arith.constant 0 : index
    %c0_0 = arith.constant 0 : index
    %0 = vector.load %arg2[%c0, %c0_0] : memref<16x32xf32, #tpu.memory_space<vmem>>, vector<16x32xf32>
    %c0_1 = arith.constant 0 : index
    %c0_2 = arith.constant 0 : index
    %1 = vector.load %arg4[%c0_1, %c0_2] : memref<32x32xf32, #tpu.memory_space<vmem>>, vector<32x32xf32>
    %cst = arith.constant dense<0.000000e+00> : vector<16x32xf32>
    %2 = tpu.matmul %0, %1, %cst {dimension_numbers = #tpu.dot_dimension_numbers<[1], [0], [0], [1], [0, 0, 1, 1], [], []>, precision = #tpu.contract_precision<fp32>} : vector<16x32xf32>, vector<32x32xf32>, vector<16x32xf32> -> vector<16x32xf32>
    %c0_3 = arith.constant 0 : index
    %c0_4 = arith.constant 0 : index
    %3 = vector.load %arg3[%c0_3, %c0_4] : memref<32x16xf32, #tpu.memory_space<vmem>>, vector<32x16xf32>
    %cst_5 = arith.constant dense<0.000000e+00> : vector<16x16xf32>
    %4 = tpu.matmul %2, %3, %cst_5 {dimension_numbers = #tpu.dot_dimension_numbers<[1], [0], [0], [1], [0, 0, 1, 1], [], []>, precision = #tpu.contract_precision<fp32>} : vector<16x32xf32>, vector<32x16xf32>, vector<16x16xf32> -> vector<16x16xf32>
    %5 = tpu.iota {dimensions = array<i32: 0>} : vector<16x1xi32>
    %c16_i32 = arith.constant 16 : i32
    %6 = arith.muli %arg0, %c16_i32 : i32
    %7 = vector.broadcast %6 : i32 to vector<16x1xi32>
    %8 = arith.addi %5, %7 : vector<16x1xi32>
    %9 = tpu.iota {dimensions = array<i32: 1>} : vector<1x16xi32>
    %c16_i32_6 = arith.constant 16 : i32
    %10 = arith.muli %arg1, %c16_i32_6 : i32
    %11 = vector.broadcast %10 : i32 to vector<1x16xi32>
    %12 = arith.addi %9, %11 : vector<1x16xi32>
    %c12_i32 = arith.constant 12 : i32
    %13 = vector.broadcast %c12_i32 : i32 to vector<16x1xi32>
    %14 = arith.cmpi slt, %8, %13 : vector<16x1xi32>
    %c12_i32_7 = arith.constant 12 : i32
    %15 = vector.broadcast %c12_i32_7 : i32 to vector<1x16xi32>
    %16 = arith.cmpi slt, %12, %15 : vector<1x16xi32>
    %17 = vector.broadcast %14 : vector<16x1xi1> to vector<16x16xi1>
    %18 = vector.broadcast %16 : vector<1x16xi1> to vector<16x16xi1>
    %19 = arith.andi %17, %18 : vector<16x16xi1>
    %cst_8 = arith.constant 0.000000e+00 : f32
    %20 = vector.broadcast %cst_8 : f32 to vector<16x16xf32>
    %21 = arith.cmpf ogt, %4, %20 : vector<16x16xf32>
    %22 = arith.andi %19, %21 : vector<16x16xi1>
    %cst_9 = arith.constant 1.000000e+00 : f32
    %cst_10 = arith.constant 0.000000e+00 : f32
    %23 = vector.broadcast %cst_9 : f32 to vector<16x16xf32>
    %24 = vector.broadcast %cst_10 : f32 to vector<16x16xf32>
    %25 = arith.select %22, %23, %24 : vector<16x16xi1>, vector<16x16xf32>
    %c0_11 = arith.constant 0 : index
    %c0_12 = arith.constant 0 : index
    %26 = vector.load %arg5[%c0_11, %c0_12] : memref<16x16xf32, #tpu.memory_space<vmem>>, vector<16x16xf32>
    tpu.vector_store %arg5[%c0_11, %c0_12], %25 {strides = array<i32>} : memref<16x16xf32, #tpu.memory_space<vmem>>, vector<16x16xf32>,
    return
  }
  func.func @transform_0(%arg0: i32, %arg1: i32) -> (i32, i32) {
    %c0_i32 = arith.constant 0 : i32
    %c0_i32_0 = arith.constant 0 : i32
    return %arg0, %c0_i32 : i32, i32
  }
  func.func @transform_1(%arg0: i32, %arg1: i32) -> (i32, i32) {
    %c0_i32 = arith.constant 0 : i32
    %c0_i32_0 = arith.constant 0 : i32
    return %c0_i32, %arg1 : i32, i32
  }
  func.func @transform_2(%arg0: i32, %arg1: i32) -> (i32, i32) {
    %c0_i32 = arith.constant 0 : i32
    %c0_i32_0 = arith.constant 0 : i32
    %c0_i32_1 = arith.constant 0 : i32
    return %c0_i32, %c0_i32_0 : i32, i32
  }
  func.func @transform_3(%arg0: i32, %arg1: i32) -> (i32, i32) {
    %c0_i32 = arith.constant 0 : i32
    return %arg0, %arg1 : i32, i32
  }
}

</mosaic_0001>

<bundles_post_ra>
// kernel: tpu_custom_call.1
= control target key start
LH: loop header
LB: loop body
LE: loop exit
PB: predicated region body
PF: predicated region fallthrough
CT: control target
= control target key end

     0   :  { %vm21_vm0 = vcmask 261120   ;;  %s1604_s0 = inlined_call_operand.vmem [shape: f32[16,32], index: 0, kind: input, shape index: {}]   ;;  %s1605_s1 = inlined_call_operand.vmem [shape: f32[32,16], index: 1, kind: input, shape index: {}]   ;;  %s1606_s2 = inlined_call_operand.vmem [shape: f32[32,32], index: 2, kind: input, shape index: {}]   ;;  %s1607_s3 = inlined_call_operand.hbm [shape: f32[16,16], index: 3, kind: output, shape index: {}]  }
   0x1   :  { %v17_v0 = vld [vmem:[%s1606_s2] sm:$0xff]  ;;  %v18_v1 = vld [vmem:[%s1606_s2 + $0x8] sm:$0xff]  ;;  %v19_v2 = vld [vmem:[%s1606_s2 + $0x10] sm:$0xff] }
   0x2   :  { %v29_v3 = vand.u32 4294901760, %v17_v0  ;;  %v32_v4 = vand.u32 4294901760, %v18_v1  ;;  %v20_v5 = vld [vmem:[%s1606_s2 + $0x18] sm:$0xff]  ;;  %v35_v6 = vand.u32 4294901760, %v19_v2  ;;  %v15_v7 = vld [vmem:[%s1604_s0] sm:$0xff]  ;;  %v16_v8 = vld [vmem:[%s1604_s0 + $0x8] sm:$0xff] }
   0x3   :  { %v38_v9 = vand.u32 4294901760, %v20_v5  ;;  %v23_v10 = vsel %vm21_vm0, %v15_v7, 0  ;;  %v26_v11 = vsel %vm21_vm0, %v16_v8, 0 }
   0x4   :  { %8 = vsyncpa [#allocation3], 0  ;;  %v1534_v12 = vpack.c.bf16 %v32_v4, %v29_v3  ;;  %v1536_v13 = vand.u32 4294901760, %v23_v10  ;;  %v1538_v14 = vand.u32 4294901760, %v26_v11  ;;  %v119_v15 = vsub.f32 %v17_v0, %v29_v3  ;;  %v556_v46 = vld [vmem:[%s1605_s1] sm:$0xff]  ;;  %v557_v47 = vld [vmem:[%s1605_s1 + $0x8] sm:$0xff] }
   0x5   :  { %v1540_v16 = vpack.c.bf16 %v38_v9, %v35_v6  ;;  %v126_v17 = vsub.f32 %v18_v1, %v32_v4  ;;  %v133_v18 = vsub.f32 %v19_v2, %v35_v6  ;;  %v140_v19 = vsub.f32 %v20_v5, %v38_v9  ;;  %v558_v53 = vld [vmem:[%s1605_s1 + $0x10] sm:$0xff]  ;;  %v559_v54 = vld [vmem:[%s1605_s1 + $0x18] sm:$0xff]  ;;  %s1490_s1 = smov [#allocation2]  }
   0x6   :  { %1347 = vmatprep.subr.bf16.mxu0 %v1534_v12  ;;  %v98_v20 = vsub.f32 %v23_v10, %v1536_v13  ;;  %v108_v21 = vsub.f32 %v26_v11, %v1538_v14  ;;  %v120_v22 = vand.u32 4294901760, %v119_v15  ;;  %v567_v48 = vand.u32 4294901760, %v556_v46  ;;  %s1131_s30 = sshll.u32 %s1490_s1, 4  ;;  %s1132_s30 = int_to_ptr.vmem [resolvable:$true] %s1131_s30 }
   0x7   :  { %1349 = vmatpush3.bf16.msra.mxu0 %v1534_v12  ;;  %v127_v23 = vand.u32 4294901760, %v126_v17  ;;  %v134_v24 = vand.u32 4294901760, %v133_v18  ;;  %v141_v25 = vand.u32 4294901760, %v140_v19  ;;  %v1362_v42 = vpack.c.bf16 %v126_v17, %v119_v15  ;;  %s1466_s4 = scalar_lea.vmem %s1132_s30, 256  ;;  %p1471_p1 = scmp.lt.s32.totalorder %s1132_s30, %s1132_s30 }
   0x8   :  { %1351 = vmatprep.subr.bf16.mxu0 %v1540_v16  ;;  %v99_v26 = vand.u32 4294901760, %v98_v20  ;;  %v109_v27 = vand.u32 4294901760, %v108_v21  ;;  %v121_v28 = vsub.f32 %v119_v15, %v120_v22  ;;  %v1366_v43 = vpack.c.bf16 %v140_v19, %v133_v18  ;;  %p1467_p0 = scmp.ne.s32.totalorder %s1132_s30, %s1466_s4  ;;  %p1472_p2 = scmp.lt.s32.totalorder %s1466_s4, %s1466_s4 }
   0x9   :  { %v128_v29 = vsub.f32 %v126_v17, %v127_v23  ;;  %v135_v30 = vsub.f32 %v133_v18, %v134_v24  ;;  %v142_v31 = vsub.f32 %v140_v19, %v141_v25  ;;  %v1378_v44 = vpack.c.bf16 %v127_v23, %v120_v22 }
   0xa   :  { %v100_v32 = vsub.f32 %v98_v20, %v99_v26  ;;  %v110_v33 = vsub.f32 %v108_v21, %v109_v27  ;;  %v122_v34 = vand.u32 4294901760, %v121_v28  ;;  %v1382_v45 = vpack.c.bf16 %v141_v25, %v134_v24  ;;  %p1473_p3 = por %p1472_p2, %p1471_p1 }
   0xb   :  { %1353 = vmatpush3.bf16.msra.mxu0 %v1540_v16  ;;  %v129_v35 = vand.u32 4294901760, %v128_v29  ;;  %v136_v36 = vand.u32 4294901760, %v135_v30  ;;  %v143_v37 = vand.u32 4294901760, %v142_v31  ;;  %v570_v49 = vand.u32 4294901760, %v557_v47 }
   0xc   :  { %v101_v38 = vand.u32 4294901760, %v100_v32  ;;  %v111_v39 = vand.u32 4294901760, %v110_v33  ;;  %v657_v51 = vsub.f32 %v556_v46, %v567_v48  ;;  %v573_v55 = vand.u32 4294901760, %v558_v53  ;;  %p1474_p4 = pnand %p1473_p3, %p1467_p0 }
   0xd   :  { %v1354_v40 = vpack.c.bf16 %v129_v35, %v122_v34  ;;  %v1358_v41 = vpack.c.bf16 %v143_v37, %v136_v36  ;;  %v1568_v50 = vpack.c.bf16 %v570_v49, %v567_v48  ;;  %v664_v52 = vsub.f32 %v557_v47, %v570_v49 }
   0xe   :  { %1222 = vmatprep.mubr.f32.mxu0 %v101_v38  ;;  %v576_v56 = vand.u32 4294901760, %v559_v54  ;;  %v658_v57 = vand.u32 4294901760, %v657_v51  ;;  %v671_v62 = vsub.f32 %v558_v53, %v573_v55  ;;  %v1094_v28 = vlaneseq }
   0xf   :  { %1223 = vmatmul.mubr.f32.vlgmr.msra.gmra.mrb[0].mxu0 %v111_v39  ;;  %1355 = vmatprep.subr.bf16.mxu0 %v1354_v40  ;;  %v665_v58 = vand.u32 4294901760, %v664_v52  ;;  %v1410_v10 = vpack.c.bf16 %v664_v52, %v657_v51  ;;  %vm1123_vm5 = vcmask 130048   ;;  %v1491_v34 = vmov 0.0  }
  0x10   :  { %1357 = vmatpush3.bf16.msra.mxu0 %v1354_v40  ;;  %1233 = vmatprep.mubr.f32.mxu0 %v1536_v13  ;;  %v1578_v59 = vpack.c.bf16 %v576_v56, %v573_v55  ;;  %v659_v60 = vsub.f32 %v657_v51, %v658_v57  ;;  %v678_v63 = vsub.f32 %v559_v54, %v576_v56  ;;  %v672_v2 = vand.u32 4294901760, %v671_v62 }
  0x11   :  { %1359 = vmatprep.subr.bf16.mxu0 %v1358_v41  ;;  %1395 = vmatprep.subr.bf16.mxu1 %v1568_v50  ;;  %v666_v61 = vsub.f32 %v664_v52, %v665_v58  ;;  %v1095_v29 = vshrl.u32 %v1094_v28, 7  ;;  %v1102_v31 = vand.u32 127, %v1094_v28 }
  0x12   :  { %1397 = vmatpush3.bf16.msra.mxu1 %v1568_v50  ;;  %v660_v0 = vand.u32 4294901760, %v659_v60  ;;  %v679_v3 = vand.u32 4294901760, %v678_v63  ;;  %v673_v5 = vsub.f32 %v671_v62, %v672_v2  ;;  %v1414_v11 = vpack.c.bf16 %v678_v63, %v671_v62 }
  0x13   :  { %1399 = vmatprep.subr.bf16.mxu1 %v1578_v59  ;;  %v667_v1 = vand.u32 4294901760, %v666_v61  ;;  %v1096_v30 = vadd.s32 8, %v1095_v29  ;;  %vm1108_vm2 = vcmp.lt.s32.totalorder %v1102_v31, 12 }
  0x14   :  { %1361 = vmatpush3.bf16.msra.mxu0 %v1358_v41  ;;  %v680_v6 = vsub.f32 %v678_v63, %v679_v3  ;;  %v674_v7 = vand.u32 4294901760, %v673_v5 }
  0x15   :  { %1363 = vmatprep.subr.bf16.mxu0 %v1362_v42  ;;  %v1402_v4 = vpack.c.bf16 %v667_v1, %v660_v0  ;;  %vm1107_vm1 = vcmp.lt.s32.totalorder %v1096_v30, 12 }
  0x16   :  { %1401 = vmatpush3.bf16.msra.mxu1 %v1578_v59  ;;  %v681_v8 = vand.u32 4294901760, %v680_v6  ;;  %vm1116_vm3 = vmand %vm1107_vm1, %vm1108_vm2 }
  0x17   :  { %1234 = vmatmul.mubr.f32.vlgmr.msra.gmra.mrb[0].mxu0 %v1538_v14  ;;  %1403 = vmatprep.subr.bf16.mxu1 %v1402_v4 }
  0x18   :  { %1365 = vmatpush3.bf16.msra.mxu0 %v1362_v42  ;;  %1244 = vmatprep.mubr.f32.mxu0 %v98_v20  ;;  %v1406_v9 = vpack.c.bf16 %v681_v8, %v674_v7 }
  0x19   :  { %1367 = vmatprep.subr.bf16.mxu0 %v1366_v43 }
  0x1c   :  { %1369 = vmatpush3.bf16.msra.mxu0 %v1366_v43 }
  0x1d   :  { %1371 = vmatprep.subr.bf16.mxu0 %v1534_v12 }
  0x1f   :  { %1245 = vmatmul.mubr.f32.vlgmr.msra.gmra.mrb[0].mxu0 %v108_v21 }
  0x20   :  { %1373 = vmatpush3.bf16.msra.mxu0 %v1534_v12  ;;  %1255 = vmatprep.mubr.f32.mxu0 %v99_v26 }
  0x21   :  { %1375 = vmatprep.subr.bf16.mxu0 %v1540_v16 }
  0x24   :  { %1377 = vmatpush3.bf16.msra.mxu0 %v1540_v16 }
  0x25   :  { %1379 = vmatprep.subr.bf16.mxu0 %v1378_v44 }
  0x27   :  { %1256 = vmatmul.mubr.f32.vlgmr.msra.gmra.mrb[0].mxu0 %v109_v27 }
  0x28   :  { %1381 = vmatpush3.bf16.msra.mxu0 %v1378_v44  ;;  %1266 = vmatprep.mubr.f32.mxu0 %v1536_v13 }
  0x29   :  { %1383 = vmatprep.subr.bf16.mxu0 %v1382_v45 }
  0x2c   :  { %1385 = vmatpush3.bf16.msra.mxu0 %v1382_v45 }
  0x2d   :  { %1387 = vmatprep.subr.bf16.mxu0 %v1534_v12 }
  0x2f   :  { %1267 = vmatmul.mubr.f32.vlgmr.msra.gmra.mrb[0].mxu0 %v1538_v14 }
  0x30   :  { %1389 = vmatpush3.bf16.msra.mxu0 %v1534_v12  ;;  %1277 = vmatprep.mubr.f32.mxu0 %v1536_v13  ;;  %v1426_v12 = vpack.c.bf16 %v665_v58, %v658_v57  ;;  %v1430_v13 = vpack.c.bf16 %v679_v3, %v672_v2 }
  0x31   :  { %1391 = vmatprep.subr.bf16.mxu0 %v1540_v16 }
  0x34   :  { %1393 = vmatpush3.bf16.msra.mxu0 %v1540_v16 }
  0x37   :  { %1278 = vmatmul.mubr.f32.vlgmr.msra.gmra.mrb[0].mxu0 %v1538_v14 }
 0x10a   :  { %v1279_v14 = vpop.f32.mrb[0].mxu0 }
 0x10b   :  { %v564_v15 = vsel %vm21_vm0, %v1279_v14, 0  ;;  %v546_v16 = vpop.f32.mrb[1].mxu0 }
 0x10c   :  { %v645_v17 = vand.u32 4294901760, %v564_v15  ;;  %v561_v18 = vsel %vm21_vm0, %v546_v16, 0 }
 0x10d   :  { %v635_v19 = vand.u32 4294901760, %v561_v18 }
 0x10e   :  { %v646_v20 = vsub.f32 %v564_v15, %v645_v17 }
 0x10f   :  { %v636_v21 = vsub.f32 %v561_v18, %v635_v19 }
 0x110   :  { %v647_v22 = vand.u32 4294901760, %v646_v20 }
 0x111   :  { %v637_v23 = vand.u32 4294901760, %v636_v21 }
 0x112   :  { %v648_v24 = vsub.f32 %v646_v20, %v647_v22 }
 0x113   :  { %v638_v25 = vsub.f32 %v636_v21, %v637_v23 }
 0x114   :  { %v649_v27 = vand.u32 4294901760, %v648_v24 }
 0x115   :  { %v639_v26 = vand.u32 4294901760, %v638_v25 }
 0x117   :  { %1288 = vmatprep.mubr.f32.mxu1 %v639_v26 }
 0x118   :  { %1289 = vmatmul.mubr.f32.vlgmr.msra.gmra.mrb[0].mxu1 %v649_v27 }
 0x119   :  { %1405 = vmatpush3.bf16.msra.mxu1 %v1402_v4  ;;  %1299 = vmatprep.mubr.f32.mxu1 %v635_v19 }
 0x11a   :  { %1407 = vmatprep.subr.bf16.mxu1 %v1406_v9 }
 0x11d   :  { %1409 = vmatpush3.bf16.msra.mxu1 %v1406_v9 }
 0x11e   :  { %1411 = vmatprep.subr.bf16.mxu1 %v1410_v10 }
 0x120   :  { %1300 = vmatmul.mubr.f32.vlgmr.msra.gmra.mrb[0].mxu1 %v645_v17 }
 0x121   :  { %1413 = vmatpush3.bf16.msra.mxu1 %v1410_v10  ;;  %1310 = vmatprep.mubr.f32.mxu1 %v636_v21 }
 0x122   :  { %1415 = vmatprep.subr.bf16.mxu1 %v1414_v11 }
 0x125   :  { %1417 = vmatpush3.bf16.msra.mxu1 %v1414_v11 }
 0x126   :  { %1419 = vmatprep.subr.bf16.mxu1 %v1568_v50 }
 0x128   :  { %1311 = vmatmul.mubr.f32.vlgmr.msra.gmra.mrb[0].mxu1 %v646_v20 }
 0x129   :  { %1421 = vmatpush3.bf16.msra.mxu1 %v1568_v50  ;;  %1321 = vmatprep.mubr.f32.mxu1 %v637_v23 }
 0x12a   :  { %1423 = vmatprep.subr.bf16.mxu1 %v1578_v59 }
 0x12d   :  { %1425 = vmatpush3.bf16.msra.mxu1 %v1578_v59 }
 0x12e   :  { %1427 = vmatprep.subr.bf16.mxu1 %v1426_v12 }
 0x130   :  { %1322 = vmatmul.mubr.f32.vlgmr.msra.gmra.mrb[0].mxu1 %v647_v22 }
 0x131   :  { %1429 = vmatpush3.bf16.msra.mxu1 %v1426_v12  ;;  %1332 = vmatprep.mubr.f32.mxu1 %v635_v19 }
 0x132   :  { %1431 = vmatprep.subr.bf16.mxu1 %v1430_v13 }
 0x135   :  { %1433 = vmatpush3.bf16.msra.mxu1 %v1430_v13 }
 0x136   :  { %1435 = vmatprep.subr.bf16.mxu1 %v1568_v50 }
 0x138   :  { %1333 = vmatmul.mubr.f32.vlgmr.msra.gmra.mrb[0].mxu1 %v645_v17 }
 0x139   :  { %1437 = vmatpush3.bf16.msra.mxu1 %v1568_v50  ;;  %1343 = vmatprep.mubr.f32.mxu1 %v635_v19 }
 0x13a   :  { %1439 = vmatprep.subr.bf16.mxu1 %v1578_v59 }
 0x13d   :  { %1441 = vmatpush3.bf16.msra.mxu1 %v1578_v59 }
 0x140   :  { %1344 = vmatmul.mubr.f32.vlgmr.msra.gmra.mrb[0].mxu1 %v645_v17 }
 0x213   :  { %v1345_v32 = vpop.f32.mrb[0].mxu1 }
 0x214   :  { %vm1118_vm4 = vcmp.gt.f32.partialorder %v1345_v32, 0.0  ;;  %v1084_v33 = vpop.f32.mrb[1].mxu1 }
 0x215   :  { %vm1120_vm6 = vmand %vm1116_vm3, %vm1118_vm4  ;;  %vm1117_vm7 = vcmp.gt.f32.partialorder %v1084_v33, 0.0 }
 0x216   :  { %v1122_v35 = vsel %vm1120_vm6, 1.0, %v1491_v34  ;;  %vm1119_vm8 = vmand %vm1108_vm2, %vm1117_vm7 }
 0x217   :  { %1125 = vst.msk [vmem:[#allocation2 + $0x8] sm:$0xff] %vm1123_vm5, %v1122_v35  ;;  %v1121_v36 = vsel %vm1119_vm8, 1.0, %v1491_v34 }
 0x218   :  { %1124 = vst.msk [vmem:[#allocation2] sm:$0xff] %vm1123_vm5, %v1121_v36 }
 0x219   :  { %1477 = shalt.err (!%p1474_p4)
}
 0x21a   :  { %s1478_s7 = scalar_lea.hbm %s1607_s3, 256 }
 0x21b   :  { %p1479_p5 = scmp.ne.s32.totalorder %s1607_s3, %s1478_s7  ;;  %p1482_p6 = scmp.lt.u32.totalorder %s1478_s7, %s1607_s3 }
 0x21d   :  { %p1484_p7 = pnand %p1482_p6, %p1479_p5 }
 0x21f   :  { %1487 = shalt.err (!%p1484_p7)
}
 0x220   :  { %s1492_s12 = smov 128   ;;  %s1493_s13 = smov 8  }
 0x221   :  { %1137 = dma.vmem_to_hbm [thread:$0]  %s1132_s30, 256, %s1607_s3, [#allocation3], %s1492_s12, %s1492_s12, %s1493_s13  }
 0x222   :  { %1488 = dma.done.wait [#allocation3], 256  }
 0x223   :  { %1489 = vsyncadd [#allocation3], 4294967040 }
 0x224   :  { %1141 = vsyncpa [#allocation3], 1 }

</bundles_post_ra>
